<compile_context>
chip_gen: v6e
topology: v6e:2x2x1
jax: 0.10.0
libtpu: 0.0.40
codegen_flags: <defaults>
</compile_context>

<pallas_src>
import functools

import jax
import jax.numpy as jnp
from jax import lax
from jax.experimental import pallas as pl
from jax.experimental.pallas import tpu as pltpu

BN_EPS = 1e-5
LANE = 128
NEG_BIG = -1e30  # finite "-inf": exp(NEG_BIG - m) underflows to exactly 0 in f32


def _round_up(n: int, m: int) -> int:
    return ((n + m - 1) // m) * m


def flat_dann_kernel(x_ref, mem_ref, w1_ref, vecs_ref, w2_ref, out_ref, *,
                     flat_size: int):
    F = flat_size

    # ---- single K=F MXU push: in-kernel concat (VPU/XLU), no b1 (cancels under BN)
    flat = jnp.concatenate([x_ref[0], mem_ref[0]], axis=-1)          # (B, F)
    h = jnp.dot(flat, w1_ref[...], preferred_element_type=jnp.float32)

    vecs = vecs_ref[...]                                              # (3, Tp)
    gamma = vecs[0:1, :F]
    beta = vecs[1:2, :F]
    b2 = vecs[2:3, :]                                                 # (1, Tp)

    # ---- BatchNorm1d (training mode: per-step batch mean / biased batch var),
    # folded to one scale + one shift, fused with ReLU
    mean = jnp.mean(h, axis=0, keepdims=True)
    var = jnp.mean((h - mean) * (h - mean), axis=0, keepdims=True)
    scale = gamma * lax.rsqrt(var + BN_EPS)
    shift = beta - mean * scale
    h = jnp.maximum(h * scale + shift, 0.0)

    # ---- decision linear (MXU) on the 128-lane-padded output tile.
    # Padded lanes carry NEG_BIG from b2 (padded w2 columns are zero), so they
    # contribute exactly 0 to the softmax reductions -- no iota/where needed.
    d = jnp.dot(h, w2_ref[...], preferred_element_type=jnp.float32) + b2

    # ---- softmax over dim=1
    m = jnp.max(d, axis=1, keepdims=True)
    e = jnp.exp(d - m)
    out_ref[0] = e * pl.reciprocal(jnp.sum(e, axis=1, keepdims=True), approx=False)


def flat_dann_forward_steps(input_symbols, memories, params):
    """Stacked forward over S independent steps.

    input_symbols: (S, B, input_dim), memories: (S, B, memory_dim).
    Weights are VMEM-resident across the whole grid; per-step blocks are pipelined.
    """
    S, B, input_dim = input_symbols.shape
    memory_dim = memories.shape[2]
    F = input_dim + memory_dim
    T = int(params["target_dim"])
    Tp = params["w2_pad"].shape[1]

    cost = pl.CostEstimate(
        flops=S * (2 * B * F * F + 2 * B * F * Tp + 10 * B * F + 4 * B * Tp),
        transcendentals=S * (B * Tp + F),      # exp per decision element + rsqrt per feature
        bytes_accessed=4 * (S * B * F          # x + mem
                            + F * F            # w1 (once)
                            + 3 * Tp           # gamma/beta/b2 pack (once)
                            + F * Tp           # w2_pad (once)
                            + S * B * Tp),     # output
    )

    out = pl.pallas_call(
        functools.partial(flat_dann_kernel, flat_size=F),
        out_shape=jax.ShapeDtypeStruct((S, B, Tp), jnp.float32),
        grid=(S,),
        in_specs=[
            pl.BlockSpec((1, B, input_dim), lambda i: (i, 0, 0)),    # per-step, pipelined
            pl.BlockSpec((1, B, memory_dim), lambda i: (i, 0, 0)),   # per-step, pipelined
            pl.BlockSpec((F, F), lambda i: (0, 0)),                  # resident across steps
            pl.BlockSpec((3, Tp), lambda i: (0, 0)),                 # resident across steps
            pl.BlockSpec((F, Tp), lambda i: (0, 0)),                 # resident across steps
        ],
        out_specs=pl.BlockSpec((1, B, Tp), lambda i: (i, 0, 0)),
        compiler_params=pltpu.CompilerParams(
            dimension_semantics=("parallel",)),                      # v7x: 2 TCs share steps
        cost_estimate=cost,
    )(input_symbols, memories, params["w1"], params["vecs"], params["w2_pad"])

    return out[..., :T]


def flat_dann_forward(input_symbol, memory, params):
    """Single forward call matching the nn.Module interface: (B, Din), (B, Dm) -> (B, T)."""
    return flat_dann_forward_steps(input_symbol[None], memory[None], params)[0]


def init_params(key, input_dim, memory_dim, target_dim):
    """Deterministic synthetic init (PyTorch-Linear-style uniform bounds).

    Weights are stored pre-transposed as (in_features, out_features).  Kernel-side
    layouts (padded w2, packed gamma/beta/b2 with NEG_BIG in padded lanes) are
    built once here, not per call.
    """
    flat_size = input_dim + memory_dim
    tp = _round_up(target_dim, LANE)
    k1, k2, k3, k4 = jax.random.split(key, 4)
    bound1 = 1.0 / jnp.sqrt(flat_size)
    bound2 = 1.0 / jnp.sqrt(flat_size)

    w1 = jax.random.uniform(k1, (flat_size, flat_size), jnp.float32, -bound1, bound1)
    b1 = jax.random.uniform(k2, (1, flat_size), jnp.float32, -bound1, bound1)
    w2 = jax.random.uniform(k3, (flat_size, target_dim), jnp.float32, -bound2, bound2)
    b2 = jax.random.uniform(k4, (1, target_dim), jnp.float32, -bound2, bound2)
    gamma = jnp.ones((1, flat_size), jnp.float32)
    beta = jnp.zeros((1, flat_size), jnp.float32)

    # kernel-side layouts
    gamma_p = jnp.pad(gamma, ((0, 0), (0, tp - flat_size)))
    beta_p = jnp.pad(beta, ((0, 0), (0, tp - flat_size)))
    b2_p = jnp.pad(b2, ((0, 0), (0, tp - target_dim)), constant_values=NEG_BIG)

    return {
        "target_dim": target_dim,
        # full (unpadded) tensors, used by the pure-JAX reference
        "w1": w1, "b1": b1, "gamma": gamma, "beta": beta, "w2": w2, "b2": b2,
        # kernel-side operands
        "vecs": jnp.concatenate([gamma_p, beta_p, b2_p], axis=0),     # (3, Tp)
        "w2_pad": jnp.pad(w2, ((0, 0), (0, tp - target_dim))),        # (F, Tp)
    }


def flat_dann_reference(input_symbol, memory, params):
    """Pure-JAX reference mirroring the PyTorch module (training-mode BN, with b1)."""
    flat = jnp.concatenate([input_symbol, memory], axis=1)
    h = flat @ params["w1"] + params["b1"]
    mean = jnp.mean(h, axis=0, keepdims=True)
    var = jnp.mean((h - mean) ** 2, axis=0, keepdims=True)
    h = (h - mean) / jnp.sqrt(var + BN_EPS) * params["gamma"] + params["beta"]
    h = jnp.maximum(h, 0.0)
    d = h @ params["w2"] + params["b2"]
    return jax.nn.softmax(d, axis=1)


if __name__ == "__main__":
    # Small shapes consistent with the module.
    batch, input_dim, memory_dim, target_dim = 8, 24, 8, 16
    steps = 16

    key = jax.random.PRNGKey(0)
    k_in, k_mem, k_par = jax.random.split(key, 3)
    params = init_params(k_par, input_dim, memory_dim, target_dim)

    # --- single forward call (the module spec) ---
    input_symbol = jax.random.normal(k_in, (batch, input_dim), jnp.float32)
    memory = jax.random.normal(k_mem, (batch, memory_dim), jnp.float32)
    out = jax.block_until_ready(flat_dann_forward(input_symbol, memory, params))
    ref = flat_dann_reference(input_symbol, memory, params)
    assert out.shape == (batch, target_dim)
    assert jnp.allclose(out, ref, atol=1e-5, rtol=1e-5), "single-step mismatch vs reference"
    assert jnp.allclose(jnp.sum(out, axis=1), 1.0, atol=1e-5), "softmax rows != 1"

    # --- stacked steps: weights VMEM-resident, per-step blocks pipelined ---
    k_xs, k_ms = jax.random.split(jax.random.PRNGKey(1))
    xs = jax.random.normal(k_xs, (steps, batch, input_dim), jnp.float32)
    mems = jax.random.normal(k_ms, (steps, batch, memory_dim), jnp.float32)
    outs = jax.block_until_ready(flat_dann_forward_steps(xs, mems, params))
    refs = jnp.stack([flat_dann_reference(xs[s], mems[s], params) for s in range(steps)])
    assert outs.shape == (steps, batch, target_dim)
    assert jnp.allclose(outs, refs, atol=1e-5, rtol=1e-5), "stacked-step mismatch vs reference"
    assert jnp.allclose(jnp.sum(outs, axis=-1), 1.0, atol=1e-5), "softmax rows != 1 (stacked)"

    print("KERNEL_OK")
</pallas_src>

<mosaic_0001>
module attributes {stable_mosaic.version = 11 : i64} {
  func.func @flat_dann_kernel(%arg0: i32, %arg1: memref<1x8x24xf32, #tpu.memory_space<vmem>>, %arg2: memref<1x8x8xf32, #tpu.memory_space<vmem>>, %arg3: memref<32x32xf32, #tpu.memory_space<vmem>>, %arg4: memref<3x128xf32, #tpu.memory_space<vmem>>, %arg5: memref<32x128xf32, #tpu.memory_space<vmem>>, %arg6: memref<1x8x128xf32, #tpu.memory_space<vmem>>) attributes {dimension_semantics = [#tpu.dimension_semantics<parallel>], iteration_bounds = array<i64: 1>, scalar_prefetch = 0 : i64, scratch_operands = 0 : i64, tpu.core_type = #tpu.core_type<tc>, window_params = [{transform_indices = @transform_0, window_bounds = array<i64: 1, 8, 24>}, {transform_indices = @transform_1, window_bounds = array<i64: 1, 8, 8>}, {pipeline_mode = #tpu.pipeline_mode<synchronous>, transform_indices = @transform_2, window_bounds = array<i64: 32, 32>}, {pipeline_mode = #tpu.pipeline_mode<synchronous>, transform_indices = @transform_3, window_bounds = array<i64: 3, 128>}, {pipeline_mode = #tpu.pipeline_mode<synchronous>, transform_indices = @transform_4, window_bounds = array<i64: 32, 128>}, {transform_indices = @transform_5, window_bounds = array<i64: 1, 8, 128>}]} {
    %c0 = arith.constant 0 : index
    %c0_0 = arith.constant 0 : index
    %c0_1 = arith.constant 0 : index
    %0 = vector.load %arg1[%c0, %c0_0, %c0_1] : memref<1x8x24xf32, #tpu.memory_space<vmem>>, vector<1x8x24xf32>
    %1 = vector.shape_cast %0 : vector<1x8x24xf32> to vector<8x24xf32>
    %c0_2 = arith.constant 0 : index
    %c0_3 = arith.constant 0 : index
    %c0_4 = arith.constant 0 : index
    %2 = vector.load %arg2[%c0_2, %c0_3, %c0_4] : memref<1x8x8xf32, #tpu.memory_space<vmem>>, vector<1x8x8xf32>
    %3 = vector.shape_cast %2 : vector<1x8x8xf32> to vector<8x8xf32>
    %4 = tpu.concatenate %1, %3 in 1 : vector<8x24xf32>, vector<8x8xf32> -> vector<8x32xf32>
    %c0_5 = arith.constant 0 : index
    %c0_6 = arith.constant 0 : index
    %5 = vector.load %arg3[%c0_5, %c0_6] : memref<32x32xf32, #tpu.memory_space<vmem>>, vector<32x32xf32>
    %cst = arith.constant dense<0.000000e+00> : vector<8x32xf32>
    %6 = tpu.matmul %4, %5, %cst {dimension_numbers = #tpu.dot_dimension_numbers<[1], [0], [0], [1], [0, 0, 1, 1], [], []>} : vector<8x32xf32>, vector<32x32xf32>, vector<8x32xf32> -> vector<8x32xf32>
    %c0_7 = arith.constant 0 : index
    %c0_8 = arith.constant 0 : index
    %7 = vector.load %arg4[%c0_7, %c0_8] : memref<3x128xf32, #tpu.memory_space<vmem>>, vector<3x128xf32>
    %8 = vector.extract_strided_slice %7 {offsets = [0, 0], sizes = [1, 32], strides = [1, 1]} : vector<3x128xf32> to vector<1x32xf32>
    %9 = vector.extract_strided_slice %7 {offsets = [1, 0], sizes = [1, 32], strides = [1, 1]} : vector<3x128xf32> to vector<1x32xf32>
    %10 = vector.extract_strided_slice %7 {offsets = [2, 0], sizes = [1, 128], strides = [1, 1]} : vector<3x128xf32> to vector<1x128xf32>
    %cst_9 = arith.constant dense<0.000000e+00> : vector<32xf32>
    %11 = vector.multi_reduction <add>, %6, %cst_9 [0] : vector<8x32xf32> to vector<32xf32>
    %12 = vector.shape_cast %11 : vector<32xf32> to vector<1x32xf32>
    %cst_10 = arith.constant 8.000000e+00 : f32
    %13 = vector.broadcast %cst_10 : f32 to vector<1x32xf32>
    %14 = arith.divf %12, %13 : vector<1x32xf32>
    %15 = vector.broadcast %14 : vector<1x32xf32> to vector<8x32xf32>
    %16 = arith.subf %6, %15 : vector<8x32xf32>
    %17 = vector.broadcast %14 : vector<1x32xf32> to vector<8x32xf32>
    %18 = arith.subf %6, %17 : vector<8x32xf32>
    %19 = arith.mulf %16, %18 : vector<8x32xf32>
    %cst_11 = arith.constant dense<0.000000e+00> : vector<32xf32>
    %20 = vector.multi_reduction <add>, %19, %cst_11 [0] : vector<8x32xf32> to vector<32xf32>
    %21 = vector.shape_cast %20 : vector<32xf32> to vector<1x32xf32>
    %cst_12 = arith.constant 8.000000e+00 : f32
    %22 = vector.broadcast %cst_12 : f32 to vector<1x32xf32>
    %23 = arith.divf %21, %22 : vector<1x32xf32>
    %cst_13 = arith.constant 9.99999974E-6 : f32
    %24 = vector.broadcast %cst_13 : f32 to vector<1x32xf32>
    %25 = arith.addf %23, %24 : vector<1x32xf32>
    %26 = math.rsqrt %25 : vector<1x32xf32>
    %27 = arith.mulf %8, %26 : vector<1x32xf32>
    %28 = arith.mulf %14, %27 : vector<1x32xf32>
    %29 = arith.subf %9, %28 : vector<1x32xf32>
    %30 = vector.broadcast %27 : vector<1x32xf32> to vector<8x32xf32>
    %31 = arith.mulf %6, %30 : vector<8x32xf32>
    %32 = vector.broadcast %29 : vector<1x32xf32> to vector<8x32xf32>
    %33 = arith.addf %31, %32 : vector<8x32xf32>
    %cst_14 = arith.constant 0.000000e+00 : f32
    %34 = vector.broadcast %cst_14 : f32 to vector<8x32xf32>
    %35 = arith.maximumf %33, %34 : vector<8x32xf32>
    %c0_15 = arith.constant 0 : index
    %c0_16 = arith.constant 0 : index
    %36 = vector.load %arg5[%c0_15, %c0_16] : memref<32x128xf32, #tpu.memory_space<vmem>>, vector<32x128xf32>
    %cst_17 = arith.constant dense<0.000000e+00> : vector<8x128xf32>
    %37 = tpu.matmul %35, %36, %cst_17 {dimension_numbers = #tpu.dot_dimension_numbers<[1], [0], [0], [1], [0, 0, 1, 1], [], []>} : vector<8x32xf32>, vector<32x128xf32>, vector<8x128xf32> -> vector<8x128xf32>
    %38 = vector.broadcast %10 : vector<1x128xf32> to vector<8x128xf32>
    %39 = arith.addf %37, %38 : vector<8x128xf32>
    %cst_18 = arith.constant dense<0xFF800000> : vector<8xf32>
    %40 = vector.multi_reduction <maximumf>, %39, %cst_18 [1] : vector<8x128xf32> to vector<8xf32>
    %41 = vector.shape_cast %40 : vector<8xf32> to vector<8x1xf32>
    %42 = vector.broadcast %41 : vector<8x1xf32> to vector<8x128xf32>
    %43 = arith.subf %39, %42 : vector<8x128xf32>
    %44 = math.exp %43 : vector<8x128xf32>
    %cst_19 = arith.constant dense<0.000000e+00> : vector<8xf32>
    %45 = vector.multi_reduction <add>, %44, %cst_19 [1] : vector<8x128xf32> to vector<8xf32>
    %46 = vector.shape_cast %45 : vector<8xf32> to vector<8x1xf32>
    %47 = tpu.reciprocal %46 : vector<8x1xf32> -> vector<8x1xf32>
    %48 = vector.broadcast %47 : vector<8x1xf32> to vector<8x128xf32>
    %49 = arith.mulf %44, %48 : vector<8x128xf32>
    %c0_20 = arith.constant 0 : index
    %c0_21 = arith.constant 0 : index
    %c0_22 = arith.constant 0 : index
    %50 = vector.load %arg6[%c0_20, %c0_21, %c0_22] : memref<1x8x128xf32, #tpu.memory_space<vmem>>, vector<1x8x128xf32>
    %51 = vector.shape_cast %50 : vector<1x8x128xf32> to vector<8x128xf32>
    %52 = vector.shape_cast %49 : vector<8x128xf32> to vector<1x8x128xf32>
    tpu.vector_store %arg6[%c0_20, %c0_21, %c0_22], %52 {strides = array<i32>} : memref<1x8x128xf32, #tpu.memory_space<vmem>>, vector<1x8x128xf32>,
    return
  }
  func.func @transform_0(%arg0: i32) -> (i32, i32, i32) {
    %c0_i32 = arith.constant 0 : i32
    %c0_i32_0 = arith.constant 0 : i32
    %c0_i32_1 = arith.constant 0 : i32
    return %arg0, %c0_i32, %c0_i32_0 : i32, i32, i32
  }
  func.func @transform_1(%arg0: i32) -> (i32, i32, i32) {
    %c0_i32 = arith.constant 0 : i32
    %c0_i32_0 = arith.constant 0 : i32
    %c0_i32_1 = arith.constant 0 : i32
    return %arg0, %c0_i32, %c0_i32_0 : i32, i32, i32
  }
  func.func @transform_2(%arg0: i32) -> (i32, i32) {
    %c0_i32 = arith.constant 0 : i32
    %c0_i32_0 = arith.constant 0 : i32
    %c0_i32_1 = arith.constant 0 : i32
    return %c0_i32, %c0_i32_0 : i32, i32
  }
  func.func @transform_3(%arg0: i32) -> (i32, i32) {
    %c0_i32 = arith.constant 0 : i32
    %c0_i32_0 = arith.constant 0 : i32
    %c0_i32_1 = arith.constant 0 : i32
    return %c0_i32, %c0_i32_0 : i32, i32
  }
  func.func @transform_4(%arg0: i32) -> (i32, i32) {
    %c0_i32 = arith.constant 0 : i32
    %c0_i32_0 = arith.constant 0 : i32
    %c0_i32_1 = arith.constant 0 : i32
    return %c0_i32, %c0_i32_0 : i32, i32
  }
  func.func @transform_5(%arg0: i32) -> (i32, i32, i32) {
    %c0_i32 = arith.constant 0 : i32
    %c0_i32_0 = arith.constant 0 : i32
    %c0_i32_1 = arith.constant 0 : i32
    return %arg0, %c0_i32, %c0_i32_0 : i32, i32, i32
  }
}

</mosaic_0001>

<bundles_post_ra>
// kernel: tpu_custom_call.1
= control target key start
LH: loop header
LB: loop body
LE: loop exit
PB: predicated region body
PF: predicated region fallthrough
CT: control target
= control target key end

     0   :  { %10 = vsyncpa [#allocation3], 0  ;;  %s525_s0 = inlined_call_operand.hbm [shape: f32[1,8,24], index: 0, kind: input, shape index: {}]   ;;  %s526_s1 = inlined_call_operand.hbm [shape: f32[1,8,8], index: 1, kind: input, shape index: {}]   ;;  %s527_s2 = inlined_call_operand.hbm [shape: f32[32,32], index: 2, kind: input, shape index: {}]   ;;  %s528_s3 = inlined_call_operand.vmem [shape: f32[3,128], index: 3, kind: input, shape index: {}]   ;;  %s529_s4 = inlined_call_operand.hbm [shape: f32[32,128], index: 4, kind: input, shape index: {}]   ;;  %s530_s5 = inlined_call_operand.hbm [shape: f32[1,8,128], index: 5, kind: output, shape index: {}]  }
   0x1   :  { %11 = vsyncpa [#allocation6], 0 }
   0x2   :  { %12 = vsyncpa [#allocation9], 0 }
   0x3   :  { %13 = vsyncpa [#allocation4], 0  ;;  %s463_s18 = smov [#allocation5]   ;;  %s464_s20 = smov [#allocation2]  }
   0x4   :  { %s30_s19 = sshll.u32 %s463_s18, 4  ;;  %s20_s21 = sshll.u32 %s464_s20, 4  ;;  %s31_s19 = int_to_ptr.vmem [resolvable:$true] %s30_s19  ;;  %s21_s21 = int_to_ptr.vmem [resolvable:$true] %s20_s21 }
   0x5   :  { %s363_s22 = scalar_lea.vmem %s31_s19, 128  ;;  %p368_p1 = scmp.lt.s32.totalorder %s31_s19, %s31_s19 }
   0x6   :  { %p364_p0 = scmp.ne.s32.totalorder %s31_s19, %s363_s22  ;;  %p369_p2 = scmp.lt.s32.totalorder %s363_s22, %s363_s22 }
   0x8   :  { %p370_p3 = por %p369_p2, %p368_p1 }
   0xa   :  { %p371_p4 = pnand %p370_p3, %p364_p0 }
   0xc   :  { %374 = shalt.err (!%p371_p4)
}
   0xd   :  { %33 = dma.hbm_to_vmem [thread:$0]  %s526_s1, 128, %s31_s19, [#allocation6]  }
   0xe   :  { %s383_s25 = scalar_lea.vmem %s21_s21, 128  ;;  %p388_p6 = scmp.lt.s32.totalorder %s21_s21, %s21_s21 }
   0xf   :  { %p384_p5 = scmp.ne.s32.totalorder %s21_s21, %s383_s25  ;;  %p389_p7 = scmp.lt.s32.totalorder %s383_s25, %s383_s25 }
  0x11   :  { %p390_p8 = por %p389_p7, %p388_p6 }
  0x13   :  { %p391_p9 = pnand %p390_p8, %p384_p5 }
  0x15   :  { %394 = shalt.err (!%p391_p9)
}
  0x16   :  { %23 = dma.hbm_to_vmem [thread:$0]  %s525_s0, 128, %s21_s21, [#allocation3]  }
  0x17   :  { %s465_s28 = smov [#allocation7]  }
  0x18   :  { %s39_s29 = sshll.u32 %s465_s28, 4  ;;  %s40_s29 = int_to_ptr.vmem [resolvable:$true] %s39_s29 }
  0x19   :  { %s403_s30 = scalar_lea.vmem %s40_s29, 512  ;;  %p408_p11 = scmp.lt.s32.totalorder %s40_s29, %s40_s29 }
  0x1a   :  { %p404_p10 = scmp.ne.s32.totalorder %s40_s29, %s403_s30  ;;  %p409_p12 = scmp.lt.s32.totalorder %s403_s30, %s403_s30 }
  0x1c   :  { %p410_p13 = por %p409_p12, %p408_p11 }
  0x1e   :  { %p411_p0 = pnand %p410_p13, %p404_p10 }
  0x20   :  { %414 = shalt.err (!%p411_p0)
}
  0x21   :  { %s466_s1 = smov 128   ;;  %s467_s6 = smov 8  }
  0x22   :  { %45 = dma.hbm_to_vmem [thread:$0]  %s527_s2, 512, %s40_s29, [#allocation6], %s466_s1, %s466_s1, %s467_s6  }
  0x23   :  { %s468_s9 = smov [#allocation8]  }
  0x24   :  { %s53_s10 = sshll.u32 %s468_s9, 4  ;;  %s54_s10 = int_to_ptr.vmem [resolvable:$true] %s53_s10 }
  0x25   :  { %s423_s0 = scalar_lea.vmem %s54_s10, 512  ;;  %p428_p2 = scmp.lt.s32.totalorder %s54_s10, %s54_s10 }
  0x26   :  { %p424_p1 = scmp.ne.s32.totalorder %s54_s10, %s423_s0  ;;  %p429_p3 = scmp.lt.s32.totalorder %s423_s0, %s423_s0 }
  0x28   :  { %p430_p4 = por %p429_p3, %p428_p2 }
  0x2a   :  { %p431_p5 = pnand %p430_p4, %p424_p1 }
  0x2c   :  { %434 = shalt.err (!%p431_p5)
}
  0x2d   :  { %59 = dma.hbm_to_vmem [thread:$0]  %s529_s4, 512, %s54_s10, [#allocation9], %s466_s1, %s466_s1, %s467_s6  }
  0x2e   :  { %455 = dma.done.wait [#allocation3], 128  }
  0x2f   :  { %456 = vsyncadd [#allocation3], 4294967168 }
  0x30   :  { %457 = dma.done.wait [#allocation6], 640  }
  0x31   :  { %458 = vsyncadd [#allocation6], 4294966656 }
  0x32   :  { %459 = dma.done.wait [#allocation9], 512  }
  0x33   :  { %460 = vsyncadd [#allocation9], 4294966784  ;;  %v469_v0 = vmov 0.0   ;;  %vm470_vm0 = vmmov 0   ;;  %v73_v1 = vld [vmem:[#allocation5] sm:$0xff]  ;;  %v82_v3 = vld [vmem:[#allocation7 + $0x10] sm:$0xff]  ;;  %v186_v34 = vlaneseq }
  0x34   :  { %317 = vmatprep.subr.mxu0 %v469_v0  ;;  %325 = vmatprep.mubr.msk.f32.mxu0 %vm470_vm0, %v469_v0  ;;  %v83_v2 = vld [vmem:[#allocation7 + $0x18] sm:$0xff]  ;;  %s471_s2 = smov 24   ;;  %v81_v4 = vld [vmem:[#allocation7 + $0x8] sm:$0xff]  ;;  %v80_v5 = vld [vmem:[#allocation7] sm:$0xff]  ;;  %vm78_vm1 = vcmask 195584   ;;  %vm84_vm2 = vcmask 261120  }
  0x35   :  { %328 = vmatprep.subr.mxu1 %v469_v0  ;;  %336 = vmatprep.mubr.msk.f32.mxu1 %vm470_vm0, %v469_v0  ;;  %v72_v6 = vld [vmem:[#allocation2] sm:$0xff]  ;;  %v200_v9 = vld [vmem:[#allocation8 + $0x18] sm:$0xff]  ;;  %v198_v11 = vld [vmem:[#allocation8 + $0x8] sm:$0xff]  ;;  %v187_v35 = vshrl.u32 %v186_v34, 7 }
  0x36   :  { %75 = vrot.lane.b32.xlu0 %v73_v1, %s471_s2  ;;  %318 = vmatpush3.msra.mxu0 %v83_v2  ;;  %v199_v10 = vld [vmem:[#allocation8 + $0x10] sm:$0xff]  ;;  %v197_v12 = vld [vmem:[#allocation8] sm:$0xff] }
  0x37   :  { %319 = vmatprep.subr.mxu0 %v469_v0  ;;  %329 = vmatpush3.msra.mxu1 %v200_v9  ;;  %v158_v36 = vld [vmem:[%s528_s3] sm:$0x7]  ;;  %v188_v39 = vsub.s32 0, %v187_v35  ;;  %v193_v43 = vsub.s32 1, %v187_v35  ;;  %v203_v49 = vsub.s32 2, %v187_v35  ;;  %s472_s3 = smov [#allocation10]  }
  0x38   :  { %320 = vmatpush3.msra.mxu0 %v82_v3  ;;  %330 = vmatprep.subr.mxu1 %v469_v0  ;;  %s294_s14 = sshll.u32 %s472_s3, 4  ;;  %s295_s14 = int_to_ptr.vmem [resolvable:$true] %s294_s14 }
  0x39   :  { %321 = vmatprep.subr.mxu0 %v469_v0  ;;  %331 = vmatpush3.msra.mxu1 %v199_v10  ;;  %v204_v50 = vrot.slane %v158_v36, %v203_v49  ;;  %s435_s15 = scalar_lea.vmem %s295_s14, 128  ;;  %p440_p7 = scmp.lt.s32.totalorder %s295_s14, %s295_s14 }
  0x3a   :  { %322 = vmatpush3.msra.mxu0 %v81_v4  ;;  %332 = vmatprep.subr.mxu1 %v469_v0  ;;  %p436_p6 = scmp.ne.s32.totalorder %s295_s14, %s435_s15  ;;  %p441_p8 = scmp.lt.s32.totalorder %s435_s15, %s435_s15 }
  0x3b   :  { %323 = vmatprep.subr.mxu0 %v469_v0  ;;  %333 = vmatpush3.msra.mxu1 %v198_v11 }
  0x3c   :  { %324 = vmatpush3.msra.mxu0 %v80_v5  ;;  %334 = vmatprep.subr.mxu1 %v469_v0  ;;  %p442_p9 = por %p441_p8, %p440_p7 }
  0x3d   :  { %335 = vmatpush3.msra.mxu1 %v197_v12 }
  0x3e   :  { %p443_p10 = pnand %p442_p9, %p436_p6 }
  0xa8   :  { %v76_v7 = vpop.permute.xlu0 %75 }
  0xa9   :  { %v79_v8 = vsel %vm78_vm1, %v72_v6, %v76_v7 }
  0xaa   :  { %326 = vmatmul.mubr.msk.f32.vlgmr.msra.gmra.mxu0 %vm84_vm2, %v79_v8 }
 0x16a   :  { %v154_v13 = vpop.f32.mrf.mxu0 }
 0x16b   :  { %v159_v14 = vsel %vm84_vm2, %v154_v13, 0.0 }
 0x16c   :  { %v160_v15 = vrot.slane %v159_v14, 4  ;;  %v327_v16 = vpop.f32.mrf.mxu0 }
 0x16e   :  { %v161_v17 = vadd.f32 %v160_v15, %v159_v14 }
 0x170   :  { %v162_v18 = vrot.slane %v161_v17, 2 }
 0x172   :  { %v163_v19 = vadd.f32 %v162_v18, %v161_v17 }
 0x174   :  { %v164_v20 = vrot.slane %v163_v19, 1 }
 0x176   :  { %v165_v21 = vadd.f32 %v164_v20, %v163_v19 }
 0x178   :  { %v167_v22 = vmul.f32 0.125, %v165_v21 }
 0x17a   :  { %v168_v23 = vsub.f32 %v154_v13, %v167_v22 }
 0x17c   :  { %v169_v24 = vmul.f32 %v168_v23, %v168_v23 }
 0x17e   :  { %v170_v25 = vsel %vm84_vm2, %v169_v24, 0.0 }
 0x17f   :  { %v171_v26 = vrot.slane %v170_v25, 4 }
 0x181   :  { %v172_v27 = vadd.f32 %v171_v26, %v170_v25 }
 0x183   :  { %v173_v28 = vrot.slane %v172_v27, 2 }
 0x185   :  { %v174_v29 = vadd.f32 %v173_v28, %v172_v27 }
 0x187   :  { %v175_v30 = vrot.slane %v174_v29, 1 }
 0x189   :  { %v176_v31 = vadd.f32 %v175_v30, %v174_v29 }
 0x18b   :  { %v177_v32 = vmul.f32 0.125, %v176_v31 }
 0x18d   :  { %v178_v33 = vadd.f32 1e-05, %v177_v32 }
 0x18f   :  { %349 = vrsqrt.f32 %v178_v33 }
 0x19c   :  { %v350_v37 = vpop.eup %349 }
 0x19d   :  { %v180_v38 = vmul.f32 %v350_v37, %v158_v36 }
 0x19f   :  { %v181_v40 = vmul.f32 %v180_v38, %v167_v22  ;;  %v189_v42 = vrot.slane %v180_v38, %v188_v39 }
 0x1a1   :  { %v183_v41 = vrot.slane %v181_v40, 7  ;;  %v190_v45 = vmul.f32 %v189_v42, %v154_v13 }
 0x1a3   :  { %v185_v44 = vsub.f32 %v158_v36, %v183_v41 }
 0x1a5   :  { %v194_v46 = vrot.slane %v185_v44, %v193_v43 }
 0x1a7   :  { %v195_v47 = vadd.f32 %v194_v46, %v190_v45 }
 0x1a9   :  { %v196_v48 = vmax.f32 %v195_v47, 0.0 }
 0x1ab   :  { %337 = vmatmul.mubr.msk.f32.vlgmr.msra.gmra.mxu1 %vm84_vm2, %v196_v48 }
 0x26b   :  { %v274_v51 = vpop.f32.mrf.mxu1 }
 0x26c   :  { %v275_v52 = vadd.f32 %v274_v51, %v204_v50 }
 0x26d   :  { %v338_v53 = vpop.f32.mrf.mxu1 }
 0x26e   :  { %278 = vmax.xlane.f32.xlu0 %v275_v52 }
 0x2f7   :  { %v279_v54 = vpop.xlane.xlu0 %278 }
 0x2f8   :  { %v280_v55 = vsub.f32 %v275_v52, %v279_v54 }
 0x2fa   :  { %v281_v56 = vmul.f32 1.442695, %v280_v55 }
 0x2fc   :  { %351 = vpow2.f32 %v281_v56 }
 0x309   :  { %v352_v57 = vpop.eup %351 }
 0x30a   :  { %283 = vadd.xlane.f32.xlu1 %v352_v57 }
 0x393   :  { %v284_v58 = vpop.xlane.xlu1 %283 }
 0x394   :  { %353 = vrcp.f32 %v284_v58 }
 0x3a1   :  { %v354_v59 = vpop.eup %353 }
 0x3a2   :  { %v286_v60 = vmul.f32 %v354_v59, %v352_v57 }
 0x3a4   :  { %287 = vst [vmem:[#allocation10] sm:$0xff] %v286_v60 }
 0x3a5   :  { %446 = shalt.err (!%p443_p10)
}
 0x3a6   :  { %297 = dma.vmem_to_hbm [thread:$0]  %s295_s14, 128, %s530_s5, [#allocation4]  }
 0x3a7   :  { %461 = dma.done.wait [#allocation4], 128  }
 0x3a8   :  { %462 = vsyncadd [#allocation4], 4294967168 }
 0x3a9   :  { %301 = vsyncpa [#allocation3], 1 }
 0x3aa   :  { %302 = vsyncpa [#allocation6], 1 }
 0x3ab   :  { %303 = vsyncpa [#allocation9], 1 }
 0x3ac   :  { %304 = vsyncpa [#allocation4], 1 }

</bundles_post_ra>
